<compile_context>
chip_gen: v6e
topology: v6e:2x2x1
jax: 0.10.0
libtpu: 0.0.40
codegen_flags: <defaults>
</compile_context>

<pallas_src>
import jax
import jax.numpy as jnp
from jax.experimental import pallas as pl
from jax.experimental.pallas import tpu as pltpu


def _cdiv(a, b):
    return -(-a // b)


def _round_up(a, b):
    return _cdiv(a, b) * b


def _mlp_kernel(x_ref, w1_ref, b1_ref, w2_ref, b2_ref, o_ref):
    """Fused fc1 -> ReLU -> fc2 on one row tile."""
    # Cast the f32 x tile to bf16 in-kernel (no extra wrapper-side HBM pass).
    x = x_ref[...].astype(w1_ref.dtype)
    # fc1 on the MXU: bf16 x bf16 -> f32 accumulation.
    h = jnp.dot(x, w1_ref[...], preferred_element_type=jnp.float32)
    # Bias + ReLU stay in f32 on the VPU (v5e has no bf16 VPU path).
    h = jnp.maximum(h + b1_ref[...], 0.0)
    # fc2: bf16 into the MXU again, f32 accumulation.
    out = jnp.dot(h.astype(w2_ref.dtype), w2_ref[...],
                  preferred_element_type=jnp.float32)
    o_ref[...] = (out + b2_ref[...]).astype(o_ref.dtype)


def _tpu_config():
    """(mxu_depth, x_tile_target_bytes, vmem_budget_bytes) for this chip."""
    try:
        kind = jax.devices()[0].device_kind.lower()
    except Exception:
        kind = ""
    mxu_depth = 128 if ("v5" in kind or "v4" in kind) else 256
    x_tile_target = (4 << 20) if "v7" in kind else (8 << 20)
    try:
        info = pltpu.get_tpu_info()
        vmem_phys = int(getattr(info, "vmem_capacity_bytes", 64 << 20))
    except Exception:
        vmem_phys = 64 << 20                    # conservative (v7x per-TC size)
    vmem_budget = (vmem_phys * 3) // 4          # ~25% headroom for the compiler
    return mxu_depth, x_tile_target, vmem_budget


def make_node_classification_forward(w1, b1, w2, b2, *, num_nodes=None,
                                     compute_dtype=jnp.bfloat16):
    """Precompute (once) the cast / kron-packed parameters and return a
    forward(x) callable implementing fc1 -> ReLU -> fc2 with a Pallas kernel."""
    dim_in, dim_hid = w1.shape
    num_class = w2.shape[1]
    mxu_depth, x_tile_target, vmem_budget = _tpu_config()

    # ---- pack factor: relabel `pack` node rows into one lane-dense row -------
    pack = 1
    if 0 < num_class < 128 and 128 % num_class == 0:
        p = 128 // num_class

        def _ok(p):
            return (p > 1
                    and (num_nodes is None or num_nodes % p == 0)
                    and p * dim_in <= mxu_depth                       # MXU depth
                    and (p * dim_in) * (p * dim_hid) <= (1 << 20)     # <=2MiB bf16
                    and (p * dim_hid) * (p * num_class) <= (1 << 20))

        while p > 1 and not _ok(p):
            p //= 2
        pack = max(p, 1)

    # ---- cast (+ optionally kron-pack) the parameters exactly once -----------
    w1c = jnp.asarray(w1, compute_dtype)
    w2c = jnp.asarray(w2, compute_dtype)
    b1c = jnp.asarray(b1, jnp.float32).reshape(1, dim_hid)
    b2c = jnp.asarray(b2, jnp.float32).reshape(1, num_class)
    plain_params = (w1c, b1c, w2c, b2c)

    packed_params = None
    if pack > 1:
        eye = jnp.eye(pack, dtype=compute_dtype)
        packed_params = (
            jnp.kron(eye, w1c),          # (pack*dim_in,  pack*dim_hid), block-diag
            jnp.tile(b1c, (1, pack)),    # (1, pack*dim_hid)
            jnp.kron(eye, w2c),          # (pack*dim_hid, pack*num_class)
            jnp.tile(b2c, (1, pack)),    # (1, pack*num_class)
        )

    isz_c = jnp.dtype(compute_dtype).itemsize

    def forward(x):
        n, d = x.shape
        assert d == dim_in, (d, dim_in)
        out_dtype = x.dtype
        isz_x = jnp.dtype(out_dtype).itemsize
        sub = max(8, 32 // isz_x)              # sublane alignment for this dtype

        if packed_params is not None and n % pack == 0 and n >= pack:
            p = pack
            w1k, b1k, w2k, b2k = packed_params
        else:
            # TODO(synk): in the unpacked path the (rows, num_class<128) output
            # lowers to masked stores; could zero-pad fc2 columns to 128 instead.
            p = 1
            w1k, b1k, w2k, b2k = plain_params

        din_k, dhid_k, ncls_k = p * dim_in, p * dim_hid, p * num_class
        rows = n // p
        xk = x.reshape(rows, din_k) if p > 1 else x    # free row-major relabel

        # ---- row tile from the VMEM budget and the HBM-stream target ---------
        x_row_b = _round_up(din_k, 128) * isz_x
        out_row_b = _round_up(ncls_k, 128) * isz_x
        h_row_b = dhid_k * (4 + isz_c)            # f32 h + bf16 copy for fc2
        tmp_row_b = din_k * isz_c + ncls_k * 4    # bf16 x copy + f32 out temp
        per_row = 2 * x_row_b + 2 * out_row_b + h_row_b + tmp_row_b
        w_bytes = 2 * ((w1k.size + w2k.size) * isz_c
                       + (b1k.size + b2k.size) * 4)
        headroom = 4 << 20
        avail = max(vmem_budget - w_bytes - headroom, 1 << 20)
        block_rows = int(min(avail // per_row, x_tile_target // max(x_row_b, 1)))
        block_rows = max((block_rows // sub) * sub, sub)

        if rows <= block_rows:
            block_rows = rows                     # single tile: no split, no pad
            nb = 1
        else:
            nb = _cdiv(rows, block_rows)
            nb = max(4, nb + (nb % 2))            # >=2 even steps per v7x core
            nb = min(nb, _cdiv(rows, sub))        # keep tiles >= one sublane group
            block_rows = _round_up(_cdiv(rows, nb), sub)
            nb = _cdiv(rows, block_rows)          # ragged last tile is masked

        vmem_need = (2 * block_rows * (x_row_b + out_row_b)
                     + block_rows * (h_row_b + tmp_row_b)
                     + w_bytes + headroom)
        vmem_limit = int(min(max(vmem_need, 16 << 20), vmem_budget))

        out_k = pl.pallas_call(
            _mlp_kernel,
            out_shape=jax.ShapeDtypeStruct((rows, ncls_k), out_dtype),
            grid_spec=pltpu.PrefetchScalarGridSpec(
                num_scalar_prefetch=0,
                grid=(nb,),
                in_specs=[
                    pl.BlockSpec((block_rows, din_k), lambda i: (i, 0)),
                    # Invariant parameter blocks: constant index_map, so Pallas
                    # keeps them resident instead of re-DMAing every step.
                    pl.BlockSpec(tuple(w1k.shape), lambda i: (0, 0)),
                    pl.BlockSpec(tuple(b1k.shape), lambda i: (0, 0)),
                    pl.BlockSpec(tuple(w2k.shape), lambda i: (0, 0)),
                    pl.BlockSpec(tuple(b2k.shape), lambda i: (0, 0)),
                ],
                out_specs=pl.BlockSpec((block_rows, ncls_k), lambda i: (i, 0)),
            ),
            compiler_params=pltpu.CompilerParams(
                dimension_semantics=("parallel",),
                vmem_limit_bytes=vmem_limit,
            ),
        )(xk, w1k, b1k, w2k, b2k)

        return out_k.reshape(n, num_class)

    return forward


def node_classification_forward(x, w1, b1, w2, b2):
    """One-shot convenience wrapper (prefer the factory to reuse packed params)."""
    return make_node_classification_forward(
        w1, b1, w2, b2, num_nodes=x.shape[0])(x)


if __name__ == "__main__":
    # Small shapes consistent with the module: N nodes, dim_in, dim_hid, num_class.
    N, dim_in, dim_hid, num_class = 8, 16, 32, 8

    key = jax.random.PRNGKey(0)
    kx, k1w, k1b, k2w, k2b = jax.random.split(key, 5)

    x = jax.random.normal(kx, (N, dim_in), jnp.float32)
    bound1 = 1.0 / (dim_in ** 0.5)
    w1 = jax.random.uniform(k1w, (dim_in, dim_hid), jnp.float32, -bound1, bound1)
    b1 = jax.random.uniform(k1b, (dim_hid,), jnp.float32, -bound1, bound1)
    bound2 = 1.0 / (dim_hid ** 0.5)
    w2 = jax.random.uniform(k2w, (dim_hid, num_class), jnp.float32, -bound2, bound2)
    b2 = jax.random.uniform(k2b, (num_class,), jnp.float32, -bound2, bound2)

    fwd = make_node_classification_forward(w1, b1, w2, b2, num_nodes=N)
    out = jax.block_until_ready(fwd(x))
    assert out.shape == (N, num_class)

    # Reference mirroring the kernel's bf16-inputs / f32-accumulation recipe.
    f32 = jnp.float32
    xb = x.astype(jnp.bfloat16).astype(f32)
    w1b = w1.astype(jnp.bfloat16).astype(f32)
    w2b = w2.astype(jnp.bfloat16).astype(f32)
    h_ref = jnp.maximum(xb @ w1b + b1, 0.0).astype(jnp.bfloat16).astype(f32)
    ref = h_ref @ w2b + b2
    assert jnp.allclose(out, ref, atol=2e-2, rtol=2e-2), \
        float(jnp.max(jnp.abs(out - ref)))

    # Loose sanity check against the pure-f32 module semantics.
    ref_f32 = jnp.maximum(x @ w1 + b1, 0.0) @ w2 + b2
    assert jnp.allclose(out, ref_f32, atol=0.15, rtol=0.05)

    print("KERNEL_OK")
</pallas_src>

<mosaic_0001>
module attributes {stable_mosaic.version = 11 : i64} {
  func.func @_mlp_kernel(%arg0: i32, %arg1: memref<1x128xf32, #tpu.memory_space<vmem>>, %arg2: memref<128x256xbf16, #tpu.memory_space<vmem>>, %arg3: memref<1x256xf32, #tpu.memory_space<vmem>>, %arg4: memref<256x64xbf16, #tpu.memory_space<vmem>>, %arg5: memref<1x64xf32, #tpu.memory_space<vmem>>, %arg6: memref<1x64xf32, #tpu.memory_space<vmem>>) attributes {dimension_semantics = [#tpu.dimension_semantics<parallel>], iteration_bounds = array<i64: 1>, scalar_prefetch = 0 : i64, scratch_operands = 0 : i64, tpu.core_type = #tpu.core_type<tc>, window_params = [{transform_indices = @transform_0, window_bounds = array<i64: 1, 128>}, {pipeline_mode = #tpu.pipeline_mode<synchronous>, transform_indices = @transform_1, window_bounds = array<i64: 128, 256>}, {pipeline_mode = #tpu.pipeline_mode<synchronous>, transform_indices = @transform_2, window_bounds = array<i64: 1, 256>}, {pipeline_mode = #tpu.pipeline_mode<synchronous>, transform_indices = @transform_3, window_bounds = array<i64: 256, 64>}, {pipeline_mode = #tpu.pipeline_mode<synchronous>, transform_indices = @transform_4, window_bounds = array<i64: 1, 64>}, {transform_indices = @transform_5, window_bounds = array<i64: 1, 64>}]} {
    %c0 = arith.constant 0 : index
    %c0_0 = arith.constant 0 : index
    %0 = vector.load %arg1[%c0, %c0_0] : memref<1x128xf32, #tpu.memory_space<vmem>>, vector<1x128xf32>
    %1 = arith.truncf %0 : vector<1x128xf32> to vector<1x128xbf16>
    %c0_1 = arith.constant 0 : index
    %c0_2 = arith.constant 0 : index
    %2 = vector.load %arg2[%c0_1, %c0_2] : memref<128x256xbf16, #tpu.memory_space<vmem>>, vector<128x256xbf16>
    %cst = arith.constant dense<0.000000e+00> : vector<1x256xf32>
    %3 = tpu.matmul %1, %2, %cst {dimension_numbers = #tpu.dot_dimension_numbers<[1], [0], [0], [1], [0, 0, 1, 1], [], []>} : vector<1x128xbf16>, vector<128x256xbf16>, vector<1x256xf32> -> vector<1x256xf32>
    %c0_3 = arith.constant 0 : index
    %c0_4 = arith.constant 0 : index
    %4 = vector.load %arg3[%c0_3, %c0_4] : memref<1x256xf32, #tpu.memory_space<vmem>>, vector<1x256xf32>
    %5 = arith.addf %3, %4 : vector<1x256xf32>
    %cst_5 = arith.constant 0.000000e+00 : f32
    %6 = vector.broadcast %cst_5 : f32 to vector<1x256xf32>
    %7 = arith.maximumf %5, %6 : vector<1x256xf32>
    %8 = arith.truncf %7 : vector<1x256xf32> to vector<1x256xbf16>
    %c0_6 = arith.constant 0 : index
    %c0_7 = arith.constant 0 : index
    %9 = vector.load %arg4[%c0_6, %c0_7] : memref<256x64xbf16, #tpu.memory_space<vmem>>, vector<256x64xbf16>
    %cst_8 = arith.constant dense<0.000000e+00> : vector<1x64xf32>
    %10 = tpu.matmul %8, %9, %cst_8 {dimension_numbers = #tpu.dot_dimension_numbers<[1], [0], [0], [1], [0, 0, 1, 1], [], []>} : vector<1x256xbf16>, vector<256x64xbf16>, vector<1x64xf32> -> vector<1x64xf32>
    %c0_9 = arith.constant 0 : index
    %c0_10 = arith.constant 0 : index
    %11 = vector.load %arg5[%c0_9, %c0_10] : memref<1x64xf32, #tpu.memory_space<vmem>>, vector<1x64xf32>
    %12 = arith.addf %10, %11 : vector<1x64xf32>
    %c0_11 = arith.constant 0 : index
    %c0_12 = arith.constant 0 : index
    %13 = vector.load %arg6[%c0_11, %c0_12] : memref<1x64xf32, #tpu.memory_space<vmem>>, vector<1x64xf32>
    tpu.vector_store %arg6[%c0_11, %c0_12], %12 {strides = array<i32>} : memref<1x64xf32, #tpu.memory_space<vmem>>, vector<1x64xf32>,
    return
  }
  func.func @transform_0(%arg0: i32) -> (i32, i32) {
    %c0_i32 = arith.constant 0 : i32
    %c0_i32_0 = arith.constant 0 : i32
    return %arg0, %c0_i32 : i32, i32
  }
  func.func @transform_1(%arg0: i32) -> (i32, i32) {
    %c0_i32 = arith.constant 0 : i32
    %c0_i32_0 = arith.constant 0 : i32
    %c0_i32_1 = arith.constant 0 : i32
    return %c0_i32, %c0_i32_0 : i32, i32
  }
  func.func @transform_2(%arg0: i32) -> (i32, i32) {
    %c0_i32 = arith.constant 0 : i32
    %c0_i32_0 = arith.constant 0 : i32
    %c0_i32_1 = arith.constant 0 : i32
    return %c0_i32, %c0_i32_0 : i32, i32
  }
  func.func @transform_3(%arg0: i32) -> (i32, i32) {
    %c0_i32 = arith.constant 0 : i32
    %c0_i32_0 = arith.constant 0 : i32
    %c0_i32_1 = arith.constant 0 : i32
    return %c0_i32, %c0_i32_0 : i32, i32
  }
  func.func @transform_4(%arg0: i32) -> (i32, i32) {
    %c0_i32 = arith.constant 0 : i32
    %c0_i32_0 = arith.constant 0 : i32
    %c0_i32_1 = arith.constant 0 : i32
    return %c0_i32, %c0_i32_0 : i32, i32
  }
  func.func @transform_5(%arg0: i32) -> (i32, i32) {
    %c0_i32 = arith.constant 0 : i32
    %c0_i32_0 = arith.constant 0 : i32
    return %arg0, %c0_i32 : i32, i32
  }
}

</mosaic_0001>

<bundles_post_ra>
// kernel: tpu_custom_call.1
= control target key start
LH: loop header
LB: loop body
LE: loop exit
PB: predicated region body
PF: predicated region fallthrough
CT: control target
= control target key end

     0   :  { %v480_v2 = vmov 0   ;;  %s620_s0 = inlined_call_operand.vmem [shape: f32[1,128], index: 0, kind: input, shape index: {}]   ;;  %s621_s1 = inlined_call_operand.vmem [shape: bf16[128,256], index: 1, kind: input, shape index: {}]   ;;  %s622_s2 = inlined_call_operand.vmem [shape: f32[1,256], index: 2, kind: input, shape index: {}]   ;;  %s623_s3 = inlined_call_operand.vmem [shape: bf16[256,64], index: 3, kind: input, shape index: {}]   ;;  %s624_s4 = inlined_call_operand.vmem [shape: f32[1,64], index: 4, kind: input, shape index: {}]   ;;  %s625_s5 = inlined_call_operand.hbm [shape: f32[1,64], index: 5, kind: output, shape index: {}]  }
   0x1   :  { %v418_v0 = vld [vmem:[%s621_s1 + $0x74] ss:$8 sps:$4 sm:$0xff]   ;;  %v420_v1 = vld [vmem:[%s621_s1 + $0x70] ss:$8 sps:$4 sm:$0xff]   ;;  %164 = vmatprep.mubr.bf16.mxu0 %v480_v2  ;;  %v421_v3 = vld [vmem:[%s621_s1 + $0x64] ss:$8 sps:$4 sm:$0xff]  }
   0x2   :  { %132 = vmatprep.subr.bf16.mxu0 %v418_v0  ;;  %v423_v4 = vld [vmem:[%s621_s1 + $0x60] ss:$8 sps:$4 sm:$0xff]   ;;  %v424_v5 = vld [vmem:[%s621_s1 + $0x54] ss:$8 sps:$4 sm:$0xff]   ;;  %v426_v6 = vld [vmem:[%s621_s1 + $0x50] ss:$8 sps:$4 sm:$0xff]  }
   0x3   :  { %133 = vmatpush1.bf16.msra.mxu0 %v420_v1  ;;  %v427_v7 = vld [vmem:[%s621_s1 + $0x44] ss:$8 sps:$4 sm:$0xff]   ;;  %v429_v8 = vld [vmem:[%s621_s1 + $0x40] ss:$8 sps:$4 sm:$0xff]   ;;  %v430_v9 = vld [vmem:[%s621_s1 + $0x34] ss:$8 sps:$4 sm:$0xff]  }
   0x4   :  { %134 = vmatprep.subr.bf16.mxu0 %v421_v3  ;;  %v442_v10 = vld [vmem:[%s623_s3 + $0x78] sm:$0xff]   ;;  %v444_v13 = vld [vmem:[%s623_s3 + $0x70] sm:$0xff]   ;;  %v446_v15 = vld [vmem:[%s623_s3 + $0x68] sm:$0xff]  }
   0x5   :  { %v443_v11 = vld [vmem:[%s623_s3 + $0x38] sm:$0xff]   ;;  %394 = vmatprep.subr.bf16.mxu1 %v442_v10  ;;  %v445_v14 = vld [vmem:[%s623_s3 + $0x30] sm:$0xff]   ;;  %v433_v16 = vld [vmem:[%s621_s1 + $0x24] ss:$8 sps:$4 sm:$0xff]  }
   0x6   :  { %v432_v12 = vld [vmem:[%s621_s1 + $0x30] ss:$8 sps:$4 sm:$0xff]   ;;  %395 = vmatpush3.bf16.msra.mxu1 %v443_v11  ;;  %v435_v17 = vld [vmem:[%s621_s1 + $0x20] ss:$8 sps:$4 sm:$0xff]   ;;  %v436_v20 = vld [vmem:[%s621_s1 + $0x14] ss:$8 sps:$4 sm:$0xff]  }
   0x7   :  { %135 = vmatpush1.bf16.msra.mxu0 %v423_v4  ;;  %396 = vmatprep.subr.bf16.mxu1 %v444_v13  ;;  %v447_v18 = vld [vmem:[%s623_s3 + $0x28] sm:$0xff]   ;;  %v448_v19 = vld [vmem:[%s623_s3 + $0x60] sm:$0xff]   ;;  %v438_v21 = vld [vmem:[%s621_s1 + $0x10] ss:$8 sps:$4 sm:$0xff]  }
   0x8   :  { %136 = vmatprep.subr.bf16.mxu0 %v424_v5  ;;  %v439_v22 = vld [vmem:[%s621_s1 + $0x4] ss:$8 sps:$4 sm:$0xff]   ;;  %v450_v24 = vld [vmem:[%s623_s3 + $0x58] sm:$0xff]  }
   0x9   :  { %v449_v23 = vld [vmem:[%s623_s3 + $0x20] sm:$0xff]   ;;  %v451_v25 = vld [vmem:[%s623_s3 + $0x18] sm:$0xff]  }
   0xa   :  { %397 = vmatpush3.bf16.msra.mxu1 %v445_v14 }
   0xb   :  { %137 = vmatpush1.bf16.msra.mxu0 %v426_v6  ;;  %398 = vmatprep.subr.bf16.mxu1 %v446_v15 }
   0xc   :  { %138 = vmatprep.subr.bf16.mxu0 %v427_v7 }
   0xe   :  { %399 = vmatpush3.bf16.msra.mxu1 %v447_v18 }
   0xf   :  { %139 = vmatpush1.bf16.msra.mxu0 %v429_v8  ;;  %400 = vmatprep.subr.bf16.mxu1 %v448_v19 }
  0x10   :  { %140 = vmatprep.subr.bf16.mxu0 %v430_v9 }
  0x12   :  { %401 = vmatpush3.bf16.msra.mxu1 %v449_v23 }
  0x13   :  { %141 = vmatpush1.bf16.msra.mxu0 %v432_v12 }
  0x14   :  { %142 = vmatprep.subr.bf16.mxu0 %v433_v16 }
  0x17   :  { %143 = vmatpush1.bf16.msra.mxu0 %v435_v17 }
  0x18   :  { %144 = vmatprep.subr.bf16.mxu0 %v436_v20 }
  0x19   :  { %10 = vsyncpa [#allocation3], 0  ;;  %v441_v26 = vld [vmem:[%s621_s1] ss:$8 sps:$4 sm:$0xff]   ;;  %402 = vmatprep.subr.bf16.mxu1 %v450_v24  ;;  %v452_v28 = vld [vmem:[%s623_s3 + $0x50] sm:$0xff]   ;;  %v122_v35 = vlaneseq  ;;  %vm346_vm0 = vcmask 516096  }
  0x1a   :  { %v22_v27 = vld [vmem:[%s620_s0] sm:$0x1]  ;;  %403 = vmatpush3.bf16.msra.mxu1 %v451_v25  ;;  %v453_v30 = vld [vmem:[%s623_s3 + $0x10] sm:$0xff]   ;;  %v454_v31 = vld [vmem:[%s623_s3 + $0x48] sm:$0xff]  }
  0x1b   :  { %145 = vmatpush1.bf16.msra.mxu0 %v438_v21  ;;  %v23_v29 = vpack.c.bf16 %v22_v27, %v22_v27  ;;  %404 = vmatprep.subr.bf16.mxu1 %v452_v28  ;;  %v455_v32 = vld [vmem:[%s623_s3 + $0x8] sm:$0xff]   ;;  %v456_v33 = vld [vmem:[%s623_s3 + $0x40] sm:$0xff]   ;;  %v123_v36 = vshrl.u32 %v122_v35, 7 }
  0x1c   :  { %146 = vmatprep.subr.bf16.mxu0 %v439_v22  ;;  %v457_v34 = vld [vmem:[%s623_s3] sm:$0xff]  }
  0x1d   :  { %v124_v37 = vsub.s32 0, %v123_v36  ;;  %v40_v38 = vld [vmem:[%s622_s2] sm:$0x3]  ;;  %v128_v39 = vsub.s32 1, %v123_v36  ;;  %s481_s2 = smov [#allocation2]  }
  0x1e   :  { %405 = vmatpush3.bf16.msra.mxu1 %v453_v30  ;;  %v209_v53 = vld [vmem:[%s624_s4] sm:$0x1]  ;;  %s354_s10 = sshll.u32 %s481_s2, 4  ;;  %s355_s10 = int_to_ptr.vmem [resolvable:$true] %s354_s10 }
  0x1f   :  { %147 = vmatpush1.bf16.msra.mxu0 %v441_v26  ;;  %406 = vmatprep.subr.bf16.mxu1 %v454_v31  ;;  %v125_v40 = vrot.slane %v40_v38, %v124_v37  ;;  %v129_v41 = vrot.slane %v40_v38, %v128_v39  ;;  %s458_s11 = scalar_lea.vmem %s355_s10, 16  ;;  %s462_s12 = scalar_lea.vmem %s355_s10, 32 }
  0x20   :  { %p459_p0 = scmp.ne.s32.totalorder %s355_s10, %s458_s11  ;;  %p463_p1 = scmp.lt.s32.totalorder %s355_s10, %s355_s10 }
  0x21   :  { %p464_p2 = scmp.lt.s32.totalorder %s462_s12, %s458_s11 }
  0x22   :  { %165 = vmatmul.mubr.bf16.vlgmr.msra.gmra.mxu0 %v23_v29  ;;  %407 = vmatpush3.bf16.msra.mxu1 %v455_v32 }
  0x23   :  { %408 = vmatprep.subr.bf16.mxu1 %v456_v33  ;;  %p465_p3 = por %p464_p2, %p463_p1 }
  0x25   :  { %p466_p4 = pnand %p465_p3, %p459_p0 }
  0x26   :  { %409 = vmatpush3.bf16.msra.mxu1 %v457_v34 }
  0xe2   :  { %v166_v42 = vpop.f32.mrf.mxu0 }
  0xe3   :  { %v167_v43 = vadd.f32 %v166_v42, %v125_v40 }
  0xe4   :  { %v168_v44 = vpop.f32.mrf.mxu0 }
  0xe5   :  { %v169_v45 = vadd.f32 %v168_v44, %v129_v41  ;;  %v173_v46 = vmax.f32 %v167_v43, 0.0 }
  0xe6   :  { %v170_v47 = vpop.f32.mrf.mxu0 }
  0xe7   :  { %v174_v48 = vmax.f32 %v169_v45, 0.0  ;;  %v175_v51 = vpack.c.bf16 %v173_v46, %v173_v46 }
  0xe8   :  { %v171_v49 = vpop.f32.mrf.mxu0 }
  0xe9   :  { %v176_v50 = vpack.c.bf16 %v174_v48, %v174_v48 }
  0xeb   :  { %338 = vmatprep.mubr.bf16.mxu1 %v176_v50 }
  0xec   :  { %339 = vmatmul.mubr.bf16.vlgmr.msra.gmra.mxu1 %v175_v51 }
 0x1ac   :  { %v410_v52 = vpop.f32.mrf.mxu1 }
 0x1ae   :  { %v411_v54 = vpop.f32.mrf.mxu1 }
 0x1af   :  { %v412_v55 = vadd.f32 %v411_v54, %v410_v52 }
 0x1b0   :  { %v413_v56 = vpop.f32.mrf.mxu1 }
 0x1b1   :  { %v341_v57 = vadd.f32 %v412_v55, %v209_v53 }
 0x1b2   :  { %v414_v58 = vpop.f32.mrf.mxu1 }
 0x1b3   :  { %347 = vst.msk [vmem:[#allocation2] sm:$0x1] %vm346_vm0, %v341_v57 }
 0x1b4   :  { %469 = shalt.err (!%p466_p4)
}
 0x1b5   :  { %357 = dma.vmem_to_hbm [thread:$0]  %s355_s10, 16, %s625_s5, [#allocation3]  }
 0x1b6   :  { %478 = dma.done.wait [#allocation3], 16  }
 0x1b7   :  { %479 = vsyncadd [#allocation3], 4294967280 }
 0x1b8   :  { %361 = vsyncpa [#allocation3], 1 }

</bundles_post_ra>
